<compile_context>
chip_gen: v7x
topology: tpu7x:2x2x1
jax: 0.10.0
libtpu: 0.0.40
codegen_flags: <defaults>
</compile_context>

<pallas_src>
import jax
import jax.numpy as jnp
from jax.experimental import pallas as pl
from jax.experimental.pallas import tpu as pltpu


def _round_up(x, m):
    return ((x + m - 1) // m) * m


def _gcn_layer_kernel(g_ref, sl_ref, xf_ref, xt_ref, w_ref, b_ref, out_ref):
    # Aggregations on the MXU (bf16 inputs, f32 accumulation).
    x_full = xf_ref[...]                                                     # (Np, inFp) bf16
    gx = jnp.dot(g_ref[...], x_full, preferred_element_type=jnp.float32)     # graph @ features
    slx = jnp.dot(sl_ref[...], x_full, preferred_element_type=jnp.float32)   # selfLoop @ features

    agg1 = gx + slx                                   # (graph + selfLoop) @ features
    agg2 = gx * xt_ref[...].astype(jnp.float32)       # (graph @ features) * features

    # Fused Linear: [agg1 | agg2] @ [[W1_t],[W2_t]] + (b1 + b2)
    agg = jnp.concatenate(
        [agg1.astype(jnp.bfloat16), agg2.astype(jnp.bfloat16)], axis=-1)     # (TM, 2*inFp)
    y = jnp.dot(agg, w_ref[...], preferred_element_type=jnp.float32) + b_ref[...]

    # LeakyReLU, PyTorch default negative_slope = 0.01.
    out_ref[...] = jnp.where(y > 0, y, 0.01 * y)


def gcn_layer(graph, selfloop, features, w1, b1, w2, b2, *, tm=256):
    """graph/selfloop: (N,N); features: (N,inF); w*: (outF,inF) torch layout; b*: (outF,)."""
    n, in_f = features.shape
    out_f = w1.shape[0]

    f32, bf16 = jnp.float32, jnp.bfloat16

    # --- tile / pad sizes -------------------------------------------------
    # Keep graph + selfLoop row tiles (bf16, double-buffered) within ~24 MiB.
    n_est = _round_up(n, 8)
    tm_cap = max(8, ((24 * 1024 * 1024) // (8 * n_est)) // 8 * 8)
    tm = max(8, min(tm, tm_cap, _round_up(n, 8)))
    n_pad = _round_up(n, tm)
    in_f_pad = _round_up(in_f, 128)
    out_f_pad = _round_up(out_f, 128)
    n_blocks = n_pad // tm

    # --- wrapper-side layout plumbing (padding, casts, weight stacking) ----
    graph_p = jnp.pad(jnp.asarray(graph, bf16), ((0, n_pad - n), (0, n_pad - n)))
    selfloop_p = jnp.pad(jnp.asarray(selfloop, bf16), ((0, n_pad - n), (0, n_pad - n)))
    feat_p = jnp.pad(jnp.asarray(features, bf16), ((0, n_pad - n), (0, in_f_pad - in_f)))

    w1_t = jnp.pad(jnp.asarray(w1, f32).T, ((0, in_f_pad - in_f), (0, out_f_pad - out_f)))
    w2_t = jnp.pad(jnp.asarray(w2, f32).T, ((0, in_f_pad - in_f), (0, out_f_pad - out_f)))
    w_stacked = jnp.concatenate([w1_t, w2_t], axis=0).astype(bf16)   # (2*inFp, outFp)
    b_comb = jnp.pad(jnp.asarray(b1, f32) + jnp.asarray(b2, f32),
                     (0, out_f_pad - out_f)).reshape(1, out_f_pad)

    cost = pl.CostEstimate(
        flops=int(2 * 2 * n_pad * n_pad * in_f_pad          # two aggregation matmuls
                  + 2 * n_pad * 2 * in_f_pad * out_f_pad),  # fused linear
        transcendentals=0,
        bytes_accessed=int(2 * n_pad * n_pad * 2            # graph + selfLoop (bf16)
                           + 2 * n_pad * in_f_pad * 2       # features (read twice)
                           + 2 * in_f_pad * out_f_pad * 2   # stacked weights
                           + n_pad * out_f_pad * 4),        # f32 output
    )

    out_pad = pl.pallas_call(
        _gcn_layer_kernel,
        out_shape=jax.ShapeDtypeStruct((n_pad, out_f_pad), f32),
        grid_spec=pltpu.PrefetchScalarGridSpec(
            num_scalar_prefetch=0,
            grid=(n_blocks,),
            in_specs=[
                pl.BlockSpec((tm, n_pad), lambda i: (i, 0)),               # graph row tile
                pl.BlockSpec((tm, n_pad), lambda i: (i, 0)),               # selfLoop row tile
                pl.BlockSpec((n_pad, in_f_pad), lambda i: (0, 0)),         # features (full)
                pl.BlockSpec((tm, in_f_pad), lambda i: (i, 0)),            # features row tile
                pl.BlockSpec((2 * in_f_pad, out_f_pad), lambda i: (0, 0)), # stacked [W1_t;W2_t]
                pl.BlockSpec((1, out_f_pad), lambda i: (0, 0)),            # combined bias
            ],
            out_specs=pl.BlockSpec((tm, out_f_pad), lambda i: (i, 0)),
        ),
        compiler_params=pltpu.CompilerParams(
            dimension_semantics=("parallel",),
            vmem_limit_bytes=48 * 1024 * 1024,
        ),
        cost_estimate=cost,
    )(graph_p, selfloop_p, feat_p, feat_p, w_stacked, b_comb)

    return out_pad[:n, :out_f]


def _reference(graph, selfloop, features, w1, b1, w2, b2):
    part1 = ((graph + selfloop) @ features) @ w1.T + b1
    part2 = ((graph @ features) * features) @ w2.T + b2
    y = part1 + part2
    return jnp.where(y > 0, y, 0.01 * y)


if __name__ == "__main__":
    N, inF, outF = 8, 32, 16

    key = jax.random.PRNGKey(0)
    k_g, k_x, k_w1, k_b1, k_w2, k_b2 = jax.random.split(key, 6)

    # Deterministic synthetic inputs / parameters.
    graph = (jax.random.uniform(k_g, (N, N)) > 0.6).astype(jnp.float32)  # sparse-ish adjacency
    selfloop = jnp.eye(N, dtype=jnp.float32)
    features = jax.random.normal(k_x, (N, inF), dtype=jnp.float32)

    # PyTorch nn.Linear parameter shapes: weight (outF, inF), bias (outF,)
    w1 = jax.random.normal(k_w1, (outF, inF), dtype=jnp.float32) * 0.1
    b1 = jax.random.normal(k_b1, (outF,), dtype=jnp.float32) * 0.1
    w2 = jax.random.normal(k_w2, (outF, inF), dtype=jnp.float32) * 0.1
    b2 = jax.random.normal(k_b2, (outF,), dtype=jnp.float32) * 0.1

    out = gcn_layer(graph, selfloop, features, w1, b1, w2, b2)
    out = jax.block_until_ready(out)

    ref = _reference(graph, selfloop, features, w1, b1, w2, b2)
    assert out.shape == (N, outF)
    # bf16 MXU inputs (f32 accumulation) -> relaxed tolerance vs the pure-f32 reference.
    max_err = float(jnp.max(jnp.abs(out - ref)))
    assert jnp.allclose(out, ref, atol=5e-2, rtol=5e-2), max_err

    print("KERNEL_OK")
</pallas_src>

<mosaic_0001>
module attributes {stable_mosaic.version = 11 : i64} {
  func.func @_gcn_layer_kernel(%arg0: i32, %arg1: memref<8x8xbf16, #tpu.memory_space<vmem>>, %arg2: memref<8x8xbf16, #tpu.memory_space<vmem>>, %arg3: memref<8x128xbf16, #tpu.memory_space<vmem>>, %arg4: memref<8x128xbf16, #tpu.memory_space<vmem>>, %arg5: memref<256x128xbf16, #tpu.memory_space<vmem>>, %arg6: memref<1x128xf32, #tpu.memory_space<vmem>>, %arg7: memref<8x128xf32, #tpu.memory_space<vmem>>) attributes {dimension_semantics = [#tpu.dimension_semantics<parallel>], iteration_bounds = array<i64: 1>, scalar_prefetch = 0 : i64, scratch_operands = 0 : i64, tpu.core_type = #tpu.core_type<tc>, window_params = [{transform_indices = @transform_0, window_bounds = array<i64: 8, 8>}, {transform_indices = @transform_1, window_bounds = array<i64: 8, 8>}, {pipeline_mode = #tpu.pipeline_mode<synchronous>, transform_indices = @transform_2, window_bounds = array<i64: 8, 128>}, {transform_indices = @transform_3, window_bounds = array<i64: 8, 128>}, {pipeline_mode = #tpu.pipeline_mode<synchronous>, transform_indices = @transform_4, window_bounds = array<i64: 256, 128>}, {pipeline_mode = #tpu.pipeline_mode<synchronous>, transform_indices = @transform_5, window_bounds = array<i64: 1, 128>}, {transform_indices = @transform_6, window_bounds = array<i64: 8, 128>}]} {
    %c0 = arith.constant 0 : index
    %c0_0 = arith.constant 0 : index
    %0 = vector.load %arg3[%c0, %c0_0] : memref<8x128xbf16, #tpu.memory_space<vmem>>, vector<8x128xbf16>
    %c0_1 = arith.constant 0 : index
    %c0_2 = arith.constant 0 : index
    %1 = vector.load %arg1[%c0_1, %c0_2] : memref<8x8xbf16, #tpu.memory_space<vmem>>, vector<8x8xbf16>
    %cst = arith.constant dense<0.000000e+00> : vector<8x128xf32>
    %2 = tpu.matmul %1, %0, %cst {dimension_numbers = #tpu.dot_dimension_numbers<[1], [0], [0], [1], [0, 0, 1, 1], [], []>} : vector<8x8xbf16>, vector<8x128xbf16>, vector<8x128xf32> -> vector<8x128xf32>
    %c0_3 = arith.constant 0 : index
    %c0_4 = arith.constant 0 : index
    %3 = vector.load %arg2[%c0_3, %c0_4] : memref<8x8xbf16, #tpu.memory_space<vmem>>, vector<8x8xbf16>
    %cst_5 = arith.constant dense<0.000000e+00> : vector<8x128xf32>
    %4 = tpu.matmul %3, %0, %cst_5 {dimension_numbers = #tpu.dot_dimension_numbers<[1], [0], [0], [1], [0, 0, 1, 1], [], []>} : vector<8x8xbf16>, vector<8x128xbf16>, vector<8x128xf32> -> vector<8x128xf32>
    %5 = arith.addf %2, %4 : vector<8x128xf32>
    %c0_6 = arith.constant 0 : index
    %c0_7 = arith.constant 0 : index
    %6 = vector.load %arg4[%c0_6, %c0_7] : memref<8x128xbf16, #tpu.memory_space<vmem>>, vector<8x128xbf16>
    %7 = arith.extf %6 : vector<8x128xbf16> to vector<8x128xf32>
    %8 = arith.mulf %2, %7 : vector<8x128xf32>
    %9 = arith.truncf %5 : vector<8x128xf32> to vector<8x128xbf16>
    %10 = arith.truncf %8 : vector<8x128xf32> to vector<8x128xbf16>
    %11 = tpu.concatenate %9, %10 in 1 : vector<8x128xbf16>, vector<8x128xbf16> -> vector<8x256xbf16>
    %c0_8 = arith.constant 0 : index
    %c0_9 = arith.constant 0 : index
    %12 = vector.load %arg5[%c0_8, %c0_9] : memref<256x128xbf16, #tpu.memory_space<vmem>>, vector<256x128xbf16>
    %cst_10 = arith.constant dense<0.000000e+00> : vector<8x128xf32>
    %13 = tpu.matmul %11, %12, %cst_10 {dimension_numbers = #tpu.dot_dimension_numbers<[1], [0], [0], [1], [0, 0, 1, 1], [], []>} : vector<8x256xbf16>, vector<256x128xbf16>, vector<8x128xf32> -> vector<8x128xf32>
    %c0_11 = arith.constant 0 : index
    %c0_12 = arith.constant 0 : index
    %14 = vector.load %arg6[%c0_11, %c0_12] : memref<1x128xf32, #tpu.memory_space<vmem>>, vector<1x128xf32>
    %15 = vector.broadcast %14 : vector<1x128xf32> to vector<8x128xf32>
    %16 = arith.addf %13, %15 : vector<8x128xf32>
    %cst_13 = arith.constant 0.000000e+00 : f32
    %17 = vector.broadcast %cst_13 : f32 to vector<8x128xf32>
    %18 = arith.cmpf ogt, %16, %17 : vector<8x128xf32>
    %cst_14 = arith.constant 0.00999999977 : f32
    %19 = vector.broadcast %cst_14 : f32 to vector<8x128xf32>
    %20 = arith.mulf %19, %16 : vector<8x128xf32>
    %21 = arith.select %18, %16, %20 : vector<8x128xi1>, vector<8x128xf32>
    %c0_15 = arith.constant 0 : index
    %c0_16 = arith.constant 0 : index
    %22 = vector.load %arg7[%c0_15, %c0_16] : memref<8x128xf32, #tpu.memory_space<vmem>>, vector<8x128xf32>
    tpu.vector_store %arg7[%c0_15, %c0_16], %21 {strides = array<i32>} : memref<8x128xf32, #tpu.memory_space<vmem>>, vector<8x128xf32>,
    return
  }
  func.func @transform_0(%arg0: i32) -> (i32, i32) {
    %c0_i32 = arith.constant 0 : i32
    %c0_i32_0 = arith.constant 0 : i32
    return %arg0, %c0_i32 : i32, i32
  }
  func.func @transform_1(%arg0: i32) -> (i32, i32) {
    %c0_i32 = arith.constant 0 : i32
    %c0_i32_0 = arith.constant 0 : i32
    return %arg0, %c0_i32 : i32, i32
  }
  func.func @transform_2(%arg0: i32) -> (i32, i32) {
    %c0_i32 = arith.constant 0 : i32
    %c0_i32_0 = arith.constant 0 : i32
    %c0_i32_1 = arith.constant 0 : i32
    return %c0_i32, %c0_i32_0 : i32, i32
  }
  func.func @transform_3(%arg0: i32) -> (i32, i32) {
    %c0_i32 = arith.constant 0 : i32
    %c0_i32_0 = arith.constant 0 : i32
    return %arg0, %c0_i32 : i32, i32
  }
  func.func @transform_4(%arg0: i32) -> (i32, i32) {
    %c0_i32 = arith.constant 0 : i32
    %c0_i32_0 = arith.constant 0 : i32
    %c0_i32_1 = arith.constant 0 : i32
    return %c0_i32, %c0_i32_0 : i32, i32
  }
  func.func @transform_5(%arg0: i32) -> (i32, i32) {
    %c0_i32 = arith.constant 0 : i32
    %c0_i32_0 = arith.constant 0 : i32
    %c0_i32_1 = arith.constant 0 : i32
    return %c0_i32, %c0_i32_0 : i32, i32
  }
  func.func @transform_6(%arg0: i32) -> (i32, i32) {
    %c0_i32 = arith.constant 0 : i32
    %c0_i32_0 = arith.constant 0 : i32
    return %arg0, %c0_i32 : i32, i32
  }
}

</mosaic_0001>

<bundles_post_ra>
// kernel: tpu_custom_call.1
= control target key start
LH: loop header
LB: loop body
LE: loop exit
PB: predicated region body
PF: predicated region fallthrough
CT: control target
= control target key end

     0   :  { %11 = vsyncpa [#allocation3], 0  ;;  %s636_s0 = inlined_call_operand.hbm [shape: bf16[8,8], index: 0, kind: input, shape index: {}]   ;;  %s637_s1 = inlined_call_operand.hbm [shape: bf16[8,8], index: 1, kind: input, shape index: {}]   ;;  %s638_s2 = inlined_call_operand.vmem [shape: bf16[8,128], index: 2, kind: input, shape index: {}]   ;;  %s639_s3 = inlined_call_operand.vmem [shape: bf16[8,128], index: 3, kind: input, shape index: {}]   ;;  %s640_s4 = inlined_call_operand.hbm [shape: bf16[256,128], index: 4, kind: input, shape index: {}]   ;;  %s641_s5 = inlined_call_operand.vmem [shape: f32[1,128], index: 5, kind: input, shape index: {}]   ;;  %s642_s6 = inlined_call_operand.hbm [shape: f32[8,128], index: 6, kind: output, shape index: {}]  }
   0x1   :  { %12 = vsyncpa [#allocation6], 0 }
   0x2   :  { %13 = vsyncpa [#allocation4], 0  ;;  %s532_s21 = smov [#allocation5]   ;;  %s533_s23 = smov [#allocation2]  }
   0x3   :  { %s30_s22 = sshll.u32 %s532_s21, 4  ;;  %s20_s24 = sshll.u32 %s533_s23, 4  ;;  %s31_s22 = int_to_ptr.vmem [resolvable:$true] %s30_s22  ;;  %s21_s24 = int_to_ptr.vmem [resolvable:$true] %s20_s24 }
   0x4   :  { %s438_s27 = scalar_lea.hbm %s637_s1, 64 }
   0x5   :  { %p439_p0 = scmp.ne.s32.totalorder %s637_s1, %s438_s27  ;;  %p442_p1 = scmp.lt.u32.totalorder %s438_s27, %s637_s1 }
   0x7   :  { %p444_p2 = pnand %p442_p1, %p439_p0 }
   0x9   :  { %447 = shalt.err (!%p444_p2)
}
   0xa   :  { %s448_s8 = scalar_lea.vmem %s31_s22, 64  ;;  %p453_p4 = scmp.lt.s32.totalorder %s31_s22, %s31_s22 }
   0xb   :  { %p449_p3 = scmp.ne.s32.totalorder %s31_s22, %s448_s8  ;;  %p454_p5 = scmp.lt.s32.totalorder %s448_s8, %s448_s8 }
   0xd   :  { %p455_p6 = por %p454_p5, %p453_p4 }
   0xf   :  { %p456_p7 = pnand %p455_p6, %p449_p3 }
  0x11   :  { %459 = shalt.err (!%p456_p7)
}
  0x12   :  { %33 = dma.hbm_to_vmem [thread:$0]  %s637_s1, 64, %s31_s22, [#allocation6]  }
  0x13   :  { %s460_s13 = scalar_lea.hbm %s636_s0, 64 }
  0x14   :  { %p461_p8 = scmp.ne.s32.totalorder %s636_s0, %s460_s13  ;;  %p464_p9 = scmp.lt.u32.totalorder %s460_s13, %s636_s0 }
  0x16   :  { %p466_p10 = pnand %p464_p9, %p461_p8 }
  0x18   :  { %469 = shalt.err (!%p466_p10)
}
  0x19   :  { %s470_s18 = scalar_lea.vmem %s21_s24, 64  ;;  %p475_p12 = scmp.lt.s32.totalorder %s21_s24, %s21_s24 }
  0x1a   :  { %p471_p11 = scmp.ne.s32.totalorder %s21_s24, %s470_s18  ;;  %p476_p13 = scmp.lt.s32.totalorder %s470_s18, %s470_s18 }
  0x1c   :  { %p477_p0 = por %p476_p13, %p475_p12 }
  0x1e   :  { %p478_p1 = pnand %p477_p0, %p471_p11 }
  0x20   :  { %481 = shalt.err (!%p478_p1)
}
  0x21   :  { %23 = dma.hbm_to_vmem [thread:$0]  %s636_s0, 64, %s21_s24, [#allocation3]  }
  0x22   :  { %s534_s20 = smov [#allocation7]   ;;  %s482_s25 = scalar_lea.hbm %s640_s4, 2048 }
  0x23   :  { %s43_s21 = sshll.u32 %s534_s20, 4  ;;  %p483_p2 = scmp.ne.s32.totalorder %s640_s4, %s482_s25  ;;  %s44_s21 = int_to_ptr.vmem [resolvable:$true] %s43_s21 }
  0x24   :  { %p486_p3 = scmp.lt.u32.totalorder %s482_s25, %s640_s4 }
  0x26   :  { %p488_p4 = pnand %p486_p3, %p483_p2 }
  0x28   :  { %491 = shalt.err (!%p488_p4)
}
  0x29   :  { %s492_s30 = scalar_lea.vmem %s44_s21, 2048  ;;  %p497_p6 = scmp.lt.s32.totalorder %s44_s21, %s44_s21 }
  0x2a   :  { %p493_p5 = scmp.ne.s32.totalorder %s44_s21, %s492_s30  ;;  %p498_p7 = scmp.lt.s32.totalorder %s492_s30, %s492_s30 }
  0x2c   :  { %p499_p8 = por %p498_p7, %p497_p6 }
  0x2e   :  { %p500_p9 = pnand %p499_p8, %p493_p5 }
  0x30   :  { %503 = shalt.err (!%p500_p9)
}
  0x31   :  { %s535_s0 = smov 64   ;;  %s536_s24 = smov 4  }
  0x32   :  { %49 = dma.hbm_to_vmem [thread:$0]  %s640_s4, 2048, %s44_s21, [#allocation6], %s535_s0, %s535_s0, %s536_s24  }
  0x33   :  { %526 = dma.done.wait [#allocation3], 64  }
  0x34   :  { %527 = vsyncadd [#allocation3], 4294967232 }
  0x35   :  { %528 = dma.done.wait [#allocation6], 2112  }
  0x36   :  { %529 = vsyncadd [#allocation6], 4294965184  ;;  %v537_v0 = vmov 0.0   ;;  %vm538_vm0 = vmmov 0   ;;  %vm68_vm1 = vcmask 1043456   ;;  %v422_v4 = vld [vmem:[#allocation7 + $0x40] sm:$0xff]  }
  0x37   :  { %402 = vmatprep.subr.bf16.mxu1 %v537_v0  ;;  %404 = vmatprep.mubr.msk.bf16.mxu1 %vm538_vm0, %v537_v0  ;;  %v62_v1 = vld [vmem:[%s638_s2] sm:$0xf]  ;;  %vm64_vm2 = vcmask 64512   ;;  %v423_v5 = vld [vmem:[#allocation7] sm:$0xff]   ;;  %v424_v6 = vld [vmem:[#allocation7 + $0x48] sm:$0xff]  }
  0x38   :  { %v63_v2 = vld [vmem:[#allocation2] sm:$0xf]  ;;  %v70_v3 = vsel %vm68_vm1, %v62_v1, 0  ;;  %380 = vmatprep.subr.bf16.mxu0 %v422_v4  ;;  %v425_v7 = vld [vmem:[#allocation7 + $0x8] sm:$0xff]   ;;  %v426_v8 = vld [vmem:[#allocation7 + $0x50] sm:$0xff]  }
  0x39   :  { %403 = vmatpush3.bf16.msra.mxu1 %v70_v3  ;;  %381 = vmatpush3.bf16.msra.mxu0 %v423_v5  ;;  %v112_v9 = vld [vmem:[#allocation5] sm:$0xf]  ;;  %v427_v10 = vld [vmem:[#allocation7 + $0x10] sm:$0xff]   ;;  %v430_v13 = vld [vmem:[#allocation7 + $0x60] sm:$0xff]  }
  0x3a   :  { %408 = vmatprep.subr.bf16.mxu1 %v537_v0  ;;  %382 = vmatprep.subr.bf16.mxu0 %v424_v6  ;;  %v428_v11 = vld [vmem:[#allocation7 + $0x58] sm:$0xff]   ;;  %v431_v14 = vld [vmem:[#allocation7 + $0x20] sm:$0xff]   ;;  %v432_v15 = vld [vmem:[#allocation7 + $0x68] sm:$0xff]  }
  0x3b   :  { %v429_v12 = vld [vmem:[#allocation7 + $0x18] sm:$0xff]   ;;  %v433_v16 = vld [vmem:[#allocation7 + $0x28] sm:$0xff]   ;;  %v434_v17 = vld [vmem:[#allocation7 + $0x70] sm:$0xff]  }
  0x3c   :  { %405 = vmatmul.mubr.msk.bf16.vlgmr.msra.gmra.mrb[0].mxu1 %vm64_vm2, %v63_v2  ;;  %v435_v18 = vld [vmem:[#allocation7 + $0x30] sm:$0xff]   ;;  %v436_v19 = vld [vmem:[#allocation7 + $0x78] sm:$0xff]  }
  0x3d   :  { %409 = vmatpush3.bf16.msra.mxu1 %v70_v3  ;;  %410 = vmatprep.mubr.msk.bf16.mxu1 %vm538_vm0, %v537_v0  ;;  %v437_v20 = vld [vmem:[#allocation7 + $0x38] sm:$0xff]  }
  0x3e   :  { %383 = vmatpush3.bf16.msra.mxu0 %v425_v7  ;;  %v157_v21 = vld [vmem:[%s639_s3] sm:$0xf]  ;;  %s539_s3 = smov [#allocation8]  }
  0x3f   :  { %384 = vmatprep.subr.bf16.mxu0 %v426_v8  ;;  %v158_v22 = vunpack.c.l.bf16 %v157_v21  ;;  %v359_v36 = vld [vmem:[%s641_s5] ss:$0 sm:$0xff]  ;;  %s347_s13 = sshll.u32 %s539_s3, 4  ;;  %s348_s13 = int_to_ptr.vmem [resolvable:$true] %s347_s13 }
  0x40   :  { %s504_s14 = scalar_lea.vmem %s348_s13, 128  ;;  %p509_p11 = scmp.lt.s32.totalorder %s348_s13, %s348_s13 }
  0x41   :  { %p505_p10 = scmp.ne.s32.totalorder %s348_s13, %s504_s14  ;;  %p510_p12 = scmp.lt.s32.totalorder %s504_s14, %s504_s14 }
  0x42   :  { %385 = vmatpush3.bf16.msra.mxu0 %v427_v10 }
  0x43   :  { %386 = vmatprep.subr.bf16.mxu0 %v428_v11  ;;  %p511_p13 = por %p510_p12, %p509_p11 }
  0x44   :  { %411 = vmatmul.mubr.msk.bf16.vlgmr.msra.gmra.mrb[4].mxu1 %vm64_vm2, %v112_v9 }
  0x45   :  { %p512_p0 = pnand %p511_p13, %p505_p10 }
  0x46   :  { %387 = vmatpush3.bf16.msra.mxu0 %v429_v12 }
  0x47   :  { %388 = vmatprep.subr.bf16.mxu0 %v430_v13 }
  0x4a   :  { %389 = vmatpush3.bf16.msra.mxu0 %v431_v14 }
  0x4b   :  { %390 = vmatprep.subr.bf16.mxu0 %v432_v15 }
  0x4e   :  { %391 = vmatpush3.bf16.msra.mxu0 %v433_v16 }
  0x4f   :  { %392 = vmatprep.subr.bf16.mxu0 %v434_v17 }
  0x52   :  { %393 = vmatpush3.bf16.msra.mxu0 %v435_v18 }
  0x53   :  { %394 = vmatprep.subr.bf16.mxu0 %v436_v19 }
  0x56   :  { %395 = vmatpush3.bf16.msra.mxu0 %v437_v20 }
 0x10f   :  { %v106_v23 = vpop.f32.mrb[0].mxu1 }
 0x110   :  { %v406_v24 = vpop.f32.mrb[1].mxu1  ;;  %v159_v25 = vmul.f32 %v158_v22, %v106_v23 }
 0x111   :  { %v109_v26 = vpop.f32.mrb[2].mxu1 }
 0x112   :  { %v407_v27 = vpop.f32.mrb[3].mxu1  ;;  %v161_v28 = vpack.c.bf16 %v159_v25, %v159_v25 }
 0x114   :  { %329 = vmatprep.mubr.bf16.mxu0 %v161_v28 }
 0x117   :  { %v150_v29 = vpop.f32.mrb[4].mxu1 }
 0x118   :  { %v156_v30 = vadd.f32 %v150_v29, %v106_v23  ;;  %v412_v31 = vpop.f32.mrb[5].mxu1 }
 0x119   :  { %v153_v32 = vpop.f32.mrb[6].mxu1 }
 0x11a   :  { %v160_v33 = vpack.c.bf16 %v156_v30, %v156_v30  ;;  %v413_v34 = vpop.f32.mrb[7].mxu1 }
 0x11c   :  { %330 = vmatmul.mubr.bf16.vlgmr.msra.gmra.mrb[0].mxu0 %v160_v33 }
 0x1ef   :  { %v396_v35 = vpop.f32.mrb[0].mxu0 }
 0x1f0   :  { %v397_v37 = vpop.f32.mrb[1].mxu0 }
 0x1f1   :  { %v398_v38 = vadd.f32 %v397_v37, %v396_v35  ;;  %v399_v39 = vpop.f32.mrb[2].mxu0 }
 0x1f2   :  { %v400_v40 = vpop.f32.mrb[3].mxu0 }
 0x1f3   :  { %v332_v41 = vadd.f32 %v398_v38, %v359_v36 }
 0x1f5   :  { %v338_v42 = vmul.f32 0.01, %v332_v41  ;;  %vm337_vm3 = vcmp.gt.f32.partialorder %v332_v41, 0.0 }
 0x1f7   :  { %v339_v43 = vsel %vm337_vm3, %v332_v41, %v338_v42 }
 0x1f8   :  { %340 = vst [vmem:[#allocation8] sm:$0xff] %v339_v43 }
 0x1f9   :  { %515 = shalt.err (!%p512_p0)
}
 0x1fa   :  { %s516_s16 = scalar_lea.hbm %s642_s6, 128 }
 0x1fb   :  { %p517_p1 = scmp.ne.s32.totalorder %s642_s6, %s516_s16  ;;  %p520_p2 = scmp.lt.u32.totalorder %s516_s16, %s642_s6 }
 0x1fd   :  { %p522_p3 = pnand %p520_p2, %p517_p1 }
 0x1ff   :  { %525 = shalt.err (!%p522_p3)
}
 0x200   :  { %350 = dma.vmem_to_hbm [thread:$0]  %s348_s13, 128, %s642_s6, [#allocation4]  }
 0x201   :  { %530 = dma.done.wait [#allocation4], 128  }
 0x202   :  { %531 = vsyncadd [#allocation4], 4294967168 }
 0x203   :  { %354 = vsyncpa [#allocation3], 1 }
 0x204   :  { %355 = vsyncpa [#allocation6], 1 }
 0x205   :  { %356 = vsyncpa [#allocation4], 1 }

</bundles_post_ra>
